<compile_context>
chip_gen: v7x
topology: tpu7x:2x2x1
jax: 0.10.0
libtpu: 0.0.40
codegen_flags: <defaults>
</compile_context>

<pallas_src>
from functools import partial

import numpy as np
import jax
import jax.numpy as jnp
from jax.experimental import pallas as pl
from jax.experimental.pallas import tpu as pltpu

# --- module-level constants (as in the original repo) -----------------------
NUM_ENCODING_DIMENSIONS = 4
QUADTREE = True  # the `quadtree` flag referenced by the module

_LANE = 128
_DOUBLE_BUFFERED_VMEM_BUDGET = 24 * 1024 * 1024   # padded, double-buffered tile footprint
_VMEM_LIMIT_BYTES = 32 * 1024 * 1024              # explicit scoped-VMEM limit (safe on v5e/v6e/v7x)
_MAX_ROW_TILE = 32768                             # sanity clamp; budget is the real constraint


# --- faithful host-side port of the encoding-table construction -------------
def compute_quadtree_code(x, y, max_width, max_height, level=0, code=''):
    if max_width == 1 and max_height == 1:
        return code
    if level == 5:
        return code
    mid_x = max_width // 2
    mid_y = max_height // 2
    if x < mid_x and y < mid_y:
        code += '0'
    elif x >= mid_x and y < mid_y:
        code += '1'
    elif x < mid_x and y >= mid_y:
        code += '2'
    else:
        code += '3'
    return compute_quadtree_code(x % mid_x if mid_x > 0 else 0,
                                 y % mid_y if mid_y > 0 else 0,
                                 mid_x, mid_y, level + 1, code)


def compute_encodings_np(height, width, max_height, max_width):
    """Exact port of PositionEncoder.compute_encodings (quadtree=True path)."""
    enc = np.zeros((height, width, NUM_ENCODING_DIMENSIONS), dtype=np.float32)
    for y in range(height):
        for x in range(width):
            enc[y, x, 0] = 2 * (x / (width - 1)) - 1 if width > 1 else 0
            enc[y, x, 1] = 2 * (y / (height - 1)) - 1 if height > 1 else 0
            enc[y, x, 2] = -1 if x < width / 2 else 1 if x > width / 2 else 0
            enc[y, x, 3] = -1 if y < height / 2 else 1 if y > height / 2 else 0
            code = compute_quadtree_code(x, y, max_width, max_height)
            for i, digit in enumerate(code):
                enc[y, x, i] = int(digit)
    return enc


# --- Pallas kernel: direct sub-slice stores (no concat temporary) ------------
def _concat_kernel(x_ref, enc_ref, o_ref, *, d_model):
    # x_ref:   (ts, D)       row tile of the flattened (B*S, D) activations
    # enc_ref: (ts, F)       matching rows of the pre-broadcast encoding table
    # o_ref:   (ts, D + F)
    o_ref[:, :d_model] = x_ref[...]   # wide, lane-dense copy of x
    o_ref[:, d_model:] = enc_ref[...]  # tiny F-lane tail (masked store; negligible, DMA-bound)


def _round_up(n, m):
    return (n + m - 1) // m * m


def _choose_row_tile(total_rows, d_model, f, itemsize):
    """Largest row tile whose lane/sublane-PADDED, double-buffered VMEM footprint fits
    a conservative 24 MiB budget (under the explicit 32 MiB scoped-VMEM limit)."""
    sublane = {4: 8, 2: 16, 1: 32}.get(itemsize, 8)
    d_pad = _round_up(max(d_model, 1), _LANE)        # x tile lane-padded width
    out_pad = _round_up(d_model + f, _LANE)          # out tile lane-padded width
    enc_pad = _round_up(f, _LANE)                    # (ts, 4) pads to (ts, 128)
    per_row = 2 * (d_pad + out_pad + enc_pad) * itemsize   # x2 for double buffering
    ts = (_DOUBLE_BUFFERED_VMEM_BUDGET // max(per_row, 1)) // sublane * sublane
    ts = int(max(sublane, min(ts, _MAX_ROW_TILE)))
    if total_rows <= ts:
        return total_rows   # single full-extent block (always layout-legal)
    return ts               # multiple of the dtype sublane tile


def position_encoder_forward(x, dimensions, max_height, max_width, *, row_tile=None):
    """Pallas-backed equivalent of PositionEncoder.forward."""
    if x.ndim != 3:
        raise ValueError(f'Expected input to be 3D, but got {x.ndim}D')
    if not QUADTREE:
        return x

    batch_size, seq_len, d_model = x.shape
    height, width = dimensions[0]
    F = NUM_ENCODING_DIMENSIONS

    if width == 0:
        # PyTorch still concatenates a zero (B, S, F) slab in this branch.
        enc_slice = np.zeros((seq_len, F), dtype=np.float32)
    else:
        enc = compute_encodings_np(height, width, max_height, max_width)
        flat = enc.reshape(-1, F)
        # PyTorch slices [:, :seq_len, :]; torch.cat requires H*W >= seq_len.
        assert flat.shape[0] >= seq_len, "seq_len exceeds H*W (would fail in torch.cat)"
        enc_slice = flat[:seq_len]

    # Pre-broadcast over batch host-side and flatten (B, S) -> rows.  The (B*S, F) table
    # is tiny (F=4) and is fetched exactly once per grid step alongside the x tile.
    enc_rows = jnp.asarray(np.tile(enc_slice, (batch_size, 1)), dtype=x.dtype)

    rows = batch_size * seq_len
    x2 = x.reshape(rows, d_model)   # contiguous row-major reshape: free in XLA

    itemsize = jnp.dtype(x.dtype).itemsize
    ts = row_tile if row_tile is not None else _choose_row_tile(rows, d_model, F, itemsize)
    n_tiles = pl.cdiv(rows, ts)

    out_shape = jax.ShapeDtypeStruct((rows, d_model + F), x.dtype)

    bytes_accessed = int(
        rows * d_model * itemsize            # read x
        + rows * F * itemsize                # read enc (pre-broadcast; read exactly once)
        + rows * (d_model + F) * itemsize    # write out
    )

    out = pl.pallas_call(
        partial(_concat_kernel, d_model=d_model),
        out_shape=out_shape,
        grid=(n_tiles,),
        in_specs=[
            pl.BlockSpec((ts, d_model), lambda r: (r, 0)),
            pl.BlockSpec((ts, F), lambda r: (r, 0)),
        ],
        out_specs=pl.BlockSpec((ts, d_model + F), lambda r: (r, 0)),
        compiler_params=pltpu.CompilerParams(
            dimension_semantics=("parallel",),
            vmem_limit_bytes=_VMEM_LIMIT_BYTES),
        cost_estimate=pl.CostEstimate(
            flops=0, transcendentals=0, bytes_accessed=bytes_accessed),
    )(x2, enc_rows)

    return out.reshape(batch_size, seq_len, d_model + F)


def _reference(x, dimensions, max_height, max_width):
    """Pure-JAX/numpy reference mirroring the PyTorch forward."""
    batch, seq_len, _ = x.shape
    h, w = dimensions[0]
    F = NUM_ENCODING_DIMENSIONS
    if w == 0:
        enc = np.zeros((seq_len, F), dtype=np.float32)
    else:
        enc = compute_encodings_np(h, w, max_height, max_width).reshape(-1, F)[:seq_len]
    enc = jnp.asarray(enc, dtype=x.dtype)
    return jnp.concatenate(
        [x, jnp.broadcast_to(enc[None], (batch, seq_len, F))], axis=-1)


if __name__ == "__main__":
    key = jax.random.PRNGKey(0)

    # --- main check: small shapes consistent with the forward ---------------
    batch, seq_len, d_model = 2, 8, 32
    max_height, max_width = 16, 16          # encoder's max grid (quadtree code length = 4)
    dimensions = [(4, 4)]                   # actual grid: H*W = 16 >= seq_len

    x = jax.random.normal(key, (batch, seq_len, d_model), dtype=jnp.float32)
    out = jax.block_until_ready(
        position_encoder_forward(x, dimensions, max_height, max_width))

    ref = _reference(x, dimensions, max_height, max_width)
    assert out.shape == (batch, seq_len, d_model + NUM_ENCODING_DIMENSIONS)
    assert out.dtype == x.dtype
    np.testing.assert_allclose(np.asarray(out), np.asarray(ref), rtol=0, atol=0)

    # --- boundary check: rows not divisible by the row tile (partial last block) ---
    batch2, seq2 = 2, 12                    # rows = 24, forced tile = 16 -> partial block
    x2 = jax.random.normal(jax.random.PRNGKey(1), (batch2, seq2, d_model),
                           dtype=jnp.float32)
    out2 = jax.block_until_ready(
        position_encoder_forward(x2, dimensions, max_height, max_width, row_tile=16))
    ref2 = _reference(x2, dimensions, max_height, max_width)
    np.testing.assert_allclose(np.asarray(out2), np.asarray(ref2), rtol=0, atol=0)

    print("KERNEL_OK")
</pallas_src>

<mosaic_0001>
module attributes {stable_mosaic.version = 11 : i64} {
  func.func @_concat_kernel(%arg0: i32, %arg1: memref<16x32xf32, #tpu.memory_space<vmem>>, %arg2: memref<16x4xf32, #tpu.memory_space<vmem>>, %arg3: memref<16x36xf32, #tpu.memory_space<vmem>>) attributes {dimension_semantics = [#tpu.dimension_semantics<parallel>], iteration_bounds = array<i64: 1>, scalar_prefetch = 0 : i64, scratch_operands = 0 : i64, tpu.core_type = #tpu.core_type<tc>, window_params = [{transform_indices = @transform_0, window_bounds = array<i64: 16, 32>}, {transform_indices = @transform_1, window_bounds = array<i64: 16, 4>}, {transform_indices = @transform_2, window_bounds = array<i64: 16, 36>}]} {
    %c0 = arith.constant 0 : index
    %c0_0 = arith.constant 0 : index
    %0 = vector.load %arg1[%c0, %c0_0] : memref<16x32xf32, #tpu.memory_space<vmem>>, vector<16x32xf32>
    %c0_1 = arith.constant 0 : index
    %c0_2 = arith.constant 0 : index
    %1 = vector.load %arg3[%c0_1, %c0_2] : memref<16x36xf32, #tpu.memory_space<vmem>>, vector<16x32xf32>
    tpu.vector_store %arg3[%c0_1, %c0_2], %0 {strides = array<i32>} : memref<16x36xf32, #tpu.memory_space<vmem>>, vector<16x32xf32>,
    %c0_3 = arith.constant 0 : index
    %c0_4 = arith.constant 0 : index
    %2 = vector.load %arg2[%c0_3, %c0_4] : memref<16x4xf32, #tpu.memory_space<vmem>>, vector<16x4xf32>
    %c0_5 = arith.constant 0 : index
    %c32 = arith.constant 32 : index
    %3 = vector.load %arg3[%c0_5, %c32] : memref<16x36xf32, #tpu.memory_space<vmem>>, vector<16x4xf32>
    tpu.vector_store %arg3[%c0_5, %c32], %2 {strides = array<i32>} : memref<16x36xf32, #tpu.memory_space<vmem>>, vector<16x4xf32>,
    return
  }
  func.func @transform_0(%arg0: i32) -> (i32, i32) {
    %c0_i32 = arith.constant 0 : i32
    %c0_i32_0 = arith.constant 0 : i32
    return %arg0, %c0_i32 : i32, i32
  }
  func.func @transform_1(%arg0: i32) -> (i32, i32) {
    %c0_i32 = arith.constant 0 : i32
    %c0_i32_0 = arith.constant 0 : i32
    return %arg0, %c0_i32 : i32, i32
  }
  func.func @transform_2(%arg0: i32) -> (i32, i32) {
    %c0_i32 = arith.constant 0 : i32
    %c0_i32_0 = arith.constant 0 : i32
    return %arg0, %c0_i32 : i32, i32
  }
}

</mosaic_0001>

<bundles_post_ra>
// kernel: tpu_custom_call.1
= control target key start
LH: loop header
LB: loop body
LE: loop exit
PB: predicated region body
PF: predicated region fallthrough
CT: control target
= control target key end

     0   :  { %vm14_vm0 = vcmask 261120   ;;  %s74_s13 = smov 32   ;;  %s117_s0 = inlined_call_operand.vmem [shape: f32[16,32], index: 0, kind: input, shape index: {}]   ;;  %s118_s1 = inlined_call_operand.vmem [shape: f32[16,4], index: 1, kind: input, shape index: {}]   ;;  %s119_s2 = inlined_call_operand.hbm [shape: f32[16,36], index: 2, kind: output, shape index: {}]  }
   0x1   :  { %v17_v0 = vld [vmem:[%s118_s1] sm:$0xff]  ;;  %v13_v2 = vld [vmem:[%s117_s0 + $0x8] sm:$0xff] }
   0x2   :  { %v12_v1 = vld [vmem:[%s117_s0] sm:$0xff]  ;;  %21 = vrot.lane.b32.xlu0 %v17_v0, %s74_s13 }
   0x3   :  { %15 = vst.msk [vmem:[#allocation2] sm:$0xff] %vm14_vm0, %v12_v1 }
   0x4   :  { %7 = vsyncpa [#allocation3], 0  ;;  %v18_v3 = vld [vmem:[%s118_s1 + $0x8] sm:$0xff]  ;;  %16 = vst.msk [vmem:[#allocation2 + $0x8] sm:$0xff] %vm14_vm0, %v13_v2  ;;  %vm27_vm1 = vcmask 294144   ;;  %s75_s18 = smov [#allocation2]  }
   0x5   :  { %s35_s19 = sshll.u32 %s75_s18, 4  ;;  %s36_s19 = int_to_ptr.vmem [resolvable:$true] %s35_s19 }
   0x6   :  { %23 = vrot.lane.b32.xlu0 %v18_v3, %s74_s13  ;;  %s50_s20 = scalar_lea.vmem %s36_s19, 256  ;;  %p55_p1 = scmp.lt.s32.totalorder %s36_s19, %s36_s19 }
   0x7   :  { %p51_p0 = scmp.ne.s32.totalorder %s36_s19, %s50_s20  ;;  %p56_p2 = scmp.lt.s32.totalorder %s50_s20, %s50_s20 }
   0x9   :  { %p57_p3 = por %p56_p2, %p55_p1 }
   0xb   :  { %p58_p4 = pnand %p57_p3, %p51_p0 }
  0x74   :  { %v22_v4 = vpop.permute.xlu0 %21 }
  0x75   :  { %28 = vst.msk [vmem:[#allocation2] sm:$0xff] %vm27_vm1, %v22_v4 }
  0x78   :  { %v24_v5 = vpop.permute.xlu0 %23 }
  0x79   :  { %29 = vst.msk [vmem:[#allocation2 + $0x8] sm:$0xff] %vm27_vm1, %v24_v5 }
  0x7a   :  { %61 = shalt.err (!%p58_p4)
}
  0x7b   :  { %s62_s1 = scalar_lea.hbm %s119_s2, 256 }
  0x7c   :  { %p63_p5 = scmp.ne.s32.totalorder %s119_s2, %s62_s1  ;;  %p66_p6 = scmp.lt.u32.totalorder %s62_s1, %s119_s2 }
  0x7e   :  { %p68_p7 = pnand %p66_p6, %p63_p5 }
  0x80   :  { %71 = shalt.err (!%p68_p7)
}
  0x81   :  { %s76_s26 = smov 128   ;;  %s77_s27 = smov 8  }
  0x82   :  { %41 = dma.vmem_to_hbm [thread:$0]  %s36_s19, 256, %s119_s2, [#allocation3], %s76_s26, %s76_s26, %s77_s27  }
  0x83   :  { %72 = dma.done.wait [#allocation3], 256  }
  0x84   :  { %73 = vsyncadd [#allocation3], 4294967040 }
  0x85   :  { %45 = vsyncpa [#allocation3], 1 }

</bundles_post_ra>
